<compile_context>
chip_gen: v5e
topology: v5e:2x2
jax: 0.10.0
libtpu: 0.0.40
codegen_flags: <defaults>
</compile_context>

<pallas_src>
import functools

import numpy as np
import jax
import jax.numpy as jnp
from jax.experimental import pallas as pl
from jax.experimental.pallas import tpu as pltpu


_SMEM = pl.BlockSpec(memory_space=pltpu.MemorySpace.SMEM)


def _round_up(x, m):
    return (x + m - 1) // m * m


def _num_tensorcores():
    """2 on v7x (2 TC/chip), 1 on v5e/v6e.  Used to pick the parallel tiling."""
    try:
        kind = jax.devices()[0].device_kind.lower()
    except Exception:
        return 1
    return 2 if ("v7" in kind or "7x" in kind) else 1


def _apply_act(y, act, alpha_ref):
    if act == "relu":
        return jnp.maximum(y, 0.0)
    elif act == "prelu":
        a = alpha_ref[0]  # scalar PReLU weight from SMEM
        return jnp.where(y > 0, y, a * y)
    raise ValueError(f"unknown activation {act!r}")


def _conv_kernel(w_ref, x_ref, *rest, act):
    # w_ref: (Cout_p, Kp) bf16 -- bias folded into column K, rows >= Cout are 0
    # x_ref: (Kp, Tp)     bf16 -- im2col^T lane-dense tile, ones row at K
    # o_ref: (Cout_p, Tp) f32  -- fully dense (sublane & lane) stores
    if act == "prelu":
        alpha_ref, o_ref = rest
    else:
        alpha_ref, o_ref = None, rest[0]
    acc = jnp.dot(w_ref[...], x_ref[...], preferred_element_type=jnp.float32)
    o_ref[...] = _apply_act(acc, act, alpha_ref).astype(o_ref.dtype)


def _pool_kernel(win_ref, *rest, act):
    # win_ref: (16, Tm) -- 9 window taps + 7 rows of -inf, pixels lane-dense.
    if act == "prelu":
        alpha_ref, o_ref = rest
    else:
        alpha_ref, o_ref = None, rest[0]
    w = win_ref[...]
    y = jnp.maximum(w[0:8, :], w[8:16, :])   # one full-slab VPU max
    y = jnp.max(y, axis=0, keepdims=True)    # sublane reduce (XLU slot)
    o_ref[...] = _apply_act(y, act, alpha_ref).astype(o_ref.dtype)


def init_params(key):
    """Deterministic parameter init mirroring the PyTorch module shapes."""
    kw, kb = jax.random.split(key, 2)
    cin, cout, kh, kw_ = 10, 10, 3, 3
    bound = 1.0 / np.sqrt(cin * kh * kw_)  # PyTorch Conv2d default init range
    conv_w = jax.random.uniform(kw, (cout, cin, kh, kw_), jnp.float32, -bound, bound)
    conv_b = jax.random.uniform(kb, (cout,), jnp.float32, -bound, bound)
    prelu_alpha = jnp.full((1,), 0.25, jnp.float32)  # nn.PReLU() default
    return {"conv_w": conv_w, "conv_b": conv_b, "prelu_alpha": prelu_alpha}


@functools.partial(jax.jit, static_argnames=("choice", "act"))
def module_dict_forward(x, params, choice, act):
    """x: NCHW float32. choice in {'conv','pool'}, act in {'relu','prelu'}."""
    alpha = params["prelu_alpha"]
    num_tc = _num_tensorcores()

    if choice == "conv":
        w, b = params["conv_w"], params["conv_b"]          # (Cout,Cin,3,3), (Cout,)
        N, Cin, H, W = x.shape
        Cout, _, KH, KW = w.shape
        Ho, Wo = H - KH + 1, W - KW + 1
        P = Ho * Wo                                        # pixels per image
        K = KH * KW * Cin                                  # contraction (90)
        Kp = _round_up(K + 1, 128)                         # +1 slot for folded bias;
        #                                                    keep at 128 (one MXU pass)
        Pp = _round_up(P, 128)
        Cout_p = _round_up(Cout, 8)                        # 10 -> 16: unmasked sublane vst

        # Wrapper-side im2col^T glue, built with ONE concat + ONE pad:
        #   x_col[n, (kh*KW+kw)*Cin + ci, ho*Wo+wo] = x[n, ci, ho+kh, wo+kw]
        # TODO(synk): fuse im2col into the kernel (9 shifted matmuls) at
        # production shapes where this extra HBM pass dominates.
        taps = [
            x[:, :, kh:kh + Ho, kw:kw + Wo].reshape(N, Cin, P)
            for kh in range(KH) for kw in range(KW)
        ]
        x_col = jnp.concatenate(taps + [jnp.ones((N, 1, P), x.dtype)], axis=1)
        x_pad = jnp.pad(x_col, ((0, 0), (0, Kp - (K + 1)), (0, Pp - P)))
        x_pad = x_pad.astype(jnp.bfloat16)                 # bf16 operands, f32 accumulate
        # Fuse batch into the lane axis (batch-major): (Kp, N*Pp).
        x_fused = jnp.transpose(x_pad, (1, 0, 2)).reshape(Kp, N * Pp)

        w_mat = jnp.transpose(w, (0, 2, 3, 1)).reshape(Cout, K)
        w_aug = jnp.concatenate([w_mat, b[:, None]], axis=1)          # bias column at K
        w_pad = jnp.pad(w_aug, ((0, Cout_p - Cout), (0, Kp - (K + 1))))
        w_pad = w_pad.astype(jnp.bfloat16)

        # Lane tiling: 1 tile on single-TC chips (no per-step overhead),
        # 2 "parallel" tiles on v7x so both TensorCores work.
        Lp = N * Pp
        tiles = num_tc if (num_tc > 1 and Lp % (num_tc * 128) == 0) else 1
        Tp = Lp // tiles
        # TODO(synk): if H/W scale up, add more pixel tiles here (2-4K lanes
        # each) so the double-buffered X block stays inside v7x's 64 MiB VMEM.

        in_specs = [
            pl.BlockSpec((Cout_p, Kp), lambda i: (0, 0)),
            pl.BlockSpec((Kp, Tp), lambda i: (0, i)),
        ]
        operands = [w_pad, x_fused]
        if act == "prelu":
            in_specs.append(_SMEM)
            operands.append(alpha)

        out_pad = pl.pallas_call(
            functools.partial(_conv_kernel, act=act),
            out_shape=jax.ShapeDtypeStruct((Cout_p, Lp), x.dtype),
            grid=(tiles,),
            in_specs=in_specs,
            out_specs=pl.BlockSpec((Cout_p, Tp), lambda i: (0, i)),
            compiler_params=pltpu.CompilerParams(
                dimension_semantics=("parallel",)),
        )(*operands)

        out = out_pad[:Cout].reshape(Cout, N, Pp)[:, :, :P]
        return jnp.transpose(out, (1, 0, 2)).reshape(N, Cout, Ho, Wo)

    elif choice == "pool":
        N, C, H, W = x.shape
        k = 3                                              # kernel=stride=3, no pad
        Ho, Wo = (H - k) // k + 1, (W - k) // k + 1
        M = N * C * Ho * Wo
        tiles = num_tc
        Mp = _round_up(M, 128 * tiles)
        Tm = Mp // tiles

        # Windows on the LEADING axis (padded 9->16 with -inf); flat pixel
        # index m is lane-dense.  M-axis zero padding is harmless: those lanes
        # are sliced off below (never reduced over).
        # TODO(synk): at production M, stack the windows in-kernel (strided
        # pl.ds loads / pltpu.roll) instead of this wrapper 6-D transpose,
        # which is a full strided HBM pass in XLA.
        xc = x[:, :, :Ho * k, :Wo * k]
        win = (xc.reshape(N, C, Ho, k, Wo, k)
                 .transpose(3, 5, 0, 1, 2, 4)              # (kh, kw, n, c, ho, wo)
                 .reshape(k * k, M))
        win = jnp.pad(win, ((0, 0), (0, Mp - M)))          # (9, Mp)
        win = jnp.concatenate(
            [win, jnp.full((16 - k * k, Mp), -jnp.inf, win.dtype)], axis=0)  # (16, Mp)

        in_specs = [pl.BlockSpec((16, Tm), lambda i: (0, i))]
        operands = [win]
        if act == "prelu":
            in_specs.append(_SMEM)
            operands.append(alpha)

        out = pl.pallas_call(
            functools.partial(_pool_kernel, act=act),
            out_shape=jax.ShapeDtypeStruct((1, Mp), x.dtype),
            grid=(tiles,),
            in_specs=in_specs,
            out_specs=pl.BlockSpec((1, Tm), lambda i: (0, i)),
            compiler_params=pltpu.CompilerParams(
                dimension_semantics=("parallel",)),
        )(*operands)

        return out[0, :M].reshape(N, C, Ho, Wo)

    else:
        raise ValueError(f"unknown choice {choice!r}")


def reference_forward(x, params, choice, act):
    """Pure-JAX reference mirroring PyTorch semantics."""
    if choice == "conv":
        y = jax.lax.conv_general_dilated(
            x, params["conv_w"], window_strides=(1, 1), padding="VALID",
            dimension_numbers=("NCHW", "OIHW", "NCHW"),
        ) + params["conv_b"][None, :, None, None]
    else:
        y = jax.lax.reduce_window(
            x, -jnp.inf, jax.lax.max,
            window_dimensions=(1, 1, 3, 3), window_strides=(1, 1, 3, 3),
            padding="VALID",
        )
    if act == "relu":
        return jnp.maximum(y, 0.0)
    a = params["prelu_alpha"][0]
    return jnp.where(y > 0, y, a * y)


if __name__ == "__main__":
    key = jax.random.PRNGKey(0)
    kx, kp = jax.random.split(key, 2)

    N, Cin, H, W = 2, 10, 16, 16                  # Conv2d(10, 10, 3) requires Cin=10
    x = jax.random.normal(kx, (N, Cin, H, W), dtype=jnp.float32)
    params = init_params(kp)

    expected_shapes = {"conv": (N, 10, H - 2, W - 2), "pool": (N, Cin, H // 3, W // 3)}

    for choice in ("conv", "pool"):
        for act in ("relu", "prelu"):
            out = module_dict_forward(x, params, choice, act)
            out = jax.block_until_ready(out)
            assert out.shape == expected_shapes[choice], (choice, out.shape)
            ref = reference_forward(x, params, choice, act)
            np.testing.assert_allclose(
                np.asarray(out), np.asarray(ref), rtol=2e-2, atol=2e-2
            )

    print("KERNEL_OK")
</pallas_src>

<mosaic_0001>
module attributes {stable_mosaic.version = 11 : i64} {
  func.func @_conv_kernel(%arg0: i32, %arg1: memref<16x128xbf16, #tpu.memory_space<vmem>>, %arg2: memref<128x512xbf16, #tpu.memory_space<vmem>>, %arg3: memref<16x512xf32, #tpu.memory_space<vmem>>) attributes {dimension_semantics = [#tpu.dimension_semantics<parallel>], iteration_bounds = array<i64: 1>, scalar_prefetch = 0 : i64, scratch_operands = 0 : i64, tpu.core_type = #tpu.core_type<tc>, window_params = [{pipeline_mode = #tpu.pipeline_mode<synchronous>, transform_indices = @transform_0, window_bounds = array<i64: 16, 128>}, {transform_indices = @transform_1, window_bounds = array<i64: 128, 512>}, {transform_indices = @transform_2, window_bounds = array<i64: 16, 512>}]} {
    %c0 = arith.constant 0 : index
    %c0_0 = arith.constant 0 : index
    %0 = vector.load %arg1[%c0, %c0_0] : memref<16x128xbf16, #tpu.memory_space<vmem>>, vector<16x128xbf16>
    %c0_1 = arith.constant 0 : index
    %c0_2 = arith.constant 0 : index
    %1 = vector.load %arg2[%c0_1, %c0_2] : memref<128x512xbf16, #tpu.memory_space<vmem>>, vector<128x512xbf16>
    %cst = arith.constant dense<0.000000e+00> : vector<16x512xf32>
    %2 = tpu.matmul %0, %1, %cst {dimension_numbers = #tpu.dot_dimension_numbers<[1], [0], [0], [1], [0, 0, 1, 1], [], []>} : vector<16x128xbf16>, vector<128x512xbf16>, vector<16x512xf32> -> vector<16x512xf32>
    %cst_3 = arith.constant 0.000000e+00 : f32
    %3 = vector.broadcast %cst_3 : f32 to vector<16x512xf32>
    %4 = arith.maximumf %2, %3 : vector<16x512xf32>
    %c0_4 = arith.constant 0 : index
    %c0_5 = arith.constant 0 : index
    %5 = vector.load %arg3[%c0_4, %c0_5] : memref<16x512xf32, #tpu.memory_space<vmem>>, vector<16x512xf32>
    tpu.vector_store %arg3[%c0_4, %c0_5], %4 {strides = array<i32>} : memref<16x512xf32, #tpu.memory_space<vmem>>, vector<16x512xf32>,
    return
  }
  func.func @transform_0(%arg0: i32) -> (i32, i32) {
    %c0_i32 = arith.constant 0 : i32
    %c0_i32_0 = arith.constant 0 : i32
    %c0_i32_1 = arith.constant 0 : i32
    return %c0_i32, %c0_i32_0 : i32, i32
  }
  func.func @transform_1(%arg0: i32) -> (i32, i32) {
    %c0_i32 = arith.constant 0 : i32
    %c0_i32_0 = arith.constant 0 : i32
    return %c0_i32, %arg0 : i32, i32
  }
  func.func @transform_2(%arg0: i32) -> (i32, i32) {
    %c0_i32 = arith.constant 0 : i32
    %c0_i32_0 = arith.constant 0 : i32
    return %c0_i32, %arg0 : i32, i32
  }
}

</mosaic_0001>

<bundles_post_ra>
// kernel: module_dict_forward.1
= control target key start
LH: loop header
LB: loop body
LE: loop exit
PB: predicated region body
PF: predicated region fallthrough
CT: control target
= control target key end

     0   :  { %s686_s1 = inlined_call_operand.vmem [shape: bf16[128,512], index: 1, kind: input, shape index: {}]   ;;  %s687_s0 = inlined_call_operand.vmem [shape: bf16[16,128], index: 0, kind: input, shape index: {}]   ;;  %s688_s2 = inlined_call_operand.vmem [shape: f32[16,512], index: 2, kind: output, shape index: {}]  }
   0x1   :  { %v405_v0 = vld [vmem:[%s686_s1 + $0xe0] sm:$0xf]  ;;  %v450_v1 = vld [vmem:[%s686_s1 + $0xec] sm:$0xf0]  ;;  %v448_v2 = vld [vmem:[%s686_s1 + $0xe4] sm:$0xf] }
   0x2   :  { %v406_v3 = vor.u32 %v450_v1, %v405_v0  ;;  %v407_v4 = vld [vmem:[%s686_s1 + $0xf0] sm:$0xf0]  ;;  %v413_v5 = vld [vmem:[%s686_s1 + $0xe8] sm:$0xf]  ;;  %v451_v6 = vld [vmem:[%s686_s1 + $0xf4] sm:$0xf0] }
   0x3   :  { %v410_v7 = vor.u32 %v448_v2, %v407_v4  ;;  %v414_v8 = vor.u32 %v451_v6, %v413_v5  ;;  %v449_v9 = vld [vmem:[%s686_s1 + $0xec] sm:$0xf]  ;;  %v415_v10 = vld [vmem:[%s686_s1 + $0xf8] sm:$0xf0]  ;;  %v389_v11 = vld [vmem:[%s686_s1 + $0xc0] sm:$0xf] }
   0x4   :  { %211 = vmatpush.bf16.msra.mxu0 %v406_v3  ;;  %v418_v12 = vor.u32 %v449_v9, %v415_v10  ;;  %v446_v13 = vld [vmem:[%s686_s1 + $0xcc] sm:$0xf0]  ;;  %v444_v14 = vld [vmem:[%s686_s1 + $0xc4] sm:$0xf]  ;;  %v391_v15 = vld [vmem:[%s686_s1 + $0xd0] sm:$0xf0] }
   0x5   :  { %225 = vmatpush.bf16.msra.mxu1 %v410_v7  ;;  %239 = vmatpush.bf16.msra.mxu2 %v414_v8  ;;  %v390_v16 = vor.u32 %v446_v13, %v389_v11  ;;  %v394_v17 = vor.u32 %v444_v14, %v391_v15  ;;  %v397_v18 = vld [vmem:[%s686_s1 + $0xc8] sm:$0xf]  ;;  %v447_v19 = vld [vmem:[%s686_s1 + $0xd4] sm:$0xf0]  ;;  %v445_v20 = vld [vmem:[%s686_s1 + $0xcc] sm:$0xf] }
   0x6   :  { %253 = vmatpush.bf16.msra.mxu3 %v418_v12  ;;  %v398_v21 = vor.u32 %v447_v19, %v397_v18  ;;  %v399_v22 = vld [vmem:[%s686_s1 + $0xd8] sm:$0xf0]  ;;  %v373_v23 = vld [vmem:[%s686_s1 + $0xa0] sm:$0xf]  ;;  %v442_v24 = vld [vmem:[%s686_s1 + $0xac] sm:$0xf0] }
   0x7   :  { %v402_v25 = vor.u32 %v445_v20, %v399_v22  ;;  %v440_v26 = vld [vmem:[%s686_s1 + $0xa4] sm:$0xf]  ;;  %v375_v27 = vld [vmem:[%s686_s1 + $0xb0] sm:$0xf0]  ;;  %v381_v28 = vld [vmem:[%s686_s1 + $0xa8] sm:$0xf]  ;;  %v374_v29 = vor.u32 %v442_v24, %v373_v23 }
   0x8   :  { %212 = vmatpush.bf16.msra.mxu0 %v390_v16  ;;  %v443_v30 = vld [vmem:[%s686_s1 + $0xb4] sm:$0xf0]  ;;  %v441_v31 = vld [vmem:[%s686_s1 + $0xac] sm:$0xf]  ;;  %v383_v32 = vld [vmem:[%s686_s1 + $0xb8] sm:$0xf0]  ;;  %v378_v33 = vor.u32 %v440_v26, %v375_v27 }
   0x9   :  { %226 = vmatpush.bf16.msra.mxu1 %v394_v17  ;;  %240 = vmatpush.bf16.msra.mxu2 %v398_v21  ;;  %v382_v34 = vor.u32 %v443_v30, %v381_v28  ;;  %v357_v35 = vld [vmem:[%s686_s1 + $0x80] sm:$0xf]  ;;  %v438_v36 = vld [vmem:[%s686_s1 + $0x8c] sm:$0xf0]  ;;  %v436_v37 = vld [vmem:[%s686_s1 + $0x84] sm:$0xf]  ;;  %v386_v38 = vor.u32 %v441_v31, %v383_v32 }
   0xa   :  { %254 = vmatpush.bf16.msra.mxu3 %v402_v25  ;;  %v359_v39 = vld [vmem:[%s686_s1 + $0x90] sm:$0xf0]  ;;  %v365_v40 = vld [vmem:[%s686_s1 + $0x88] sm:$0xf]  ;;  %v439_v41 = vld [vmem:[%s686_s1 + $0x94] sm:$0xf0]  ;;  %v358_v44 = vor.u32 %v438_v36, %v357_v35 }
   0xb   :  { %v437_v42 = vld [vmem:[%s686_s1 + $0x8c] sm:$0xf]  ;;  %v367_v43 = vld [vmem:[%s686_s1 + $0x98] sm:$0xf0]  ;;  %v362_v45 = vor.u32 %v436_v37, %v359_v39  ;;  %v366_v46 = vor.u32 %v439_v41, %v365_v40  ;;  %v341_v47 = vld [vmem:[%s686_s1 + $0x60] sm:$0xf] }
   0xc   :  { %213 = vmatpush.bf16.msra.mxu0 %v374_v29  ;;  %v434_v48 = vld [vmem:[%s686_s1 + $0x6c] sm:$0xf0]  ;;  %v432_v49 = vld [vmem:[%s686_s1 + $0x64] sm:$0xf]  ;;  %v370_v50 = vor.u32 %v437_v42, %v367_v43  ;;  %v343_v51 = vld [vmem:[%s686_s1 + $0x70] sm:$0xf0] }
   0xd   :  { %227 = vmatpush.bf16.msra.mxu1 %v378_v33  ;;  %241 = vmatpush.bf16.msra.mxu2 %v382_v34  ;;  %v349_v52 = vld [vmem:[%s686_s1 + $0x68] sm:$0xf]  ;;  %v435_v53 = vld [vmem:[%s686_s1 + $0x74] sm:$0xf0]  ;;  %v433_v54 = vld [vmem:[%s686_s1 + $0x6c] sm:$0xf]  ;;  %v342_v56 = vor.u32 %v434_v48, %v341_v47  ;;  %v346_v57 = vor.u32 %v432_v49, %v343_v51 }
   0xe   :  { %255 = vmatpush.bf16.msra.mxu3 %v386_v38  ;;  %v351_v55 = vld [vmem:[%s686_s1 + $0x78] sm:$0xf0]  ;;  %v350_v58 = vor.u32 %v435_v53, %v349_v52  ;;  %v325_v59 = vld [vmem:[%s686_s1 + $0x40] sm:$0xf]  ;;  %v430_v60 = vld [vmem:[%s686_s1 + $0x4c] sm:$0xf0] }
   0xf   :  { %v428_v61 = vld [vmem:[%s686_s1 + $0x44] sm:$0xf]  ;;  %v354_v62 = vor.u32 %v433_v54, %v351_v55  ;;  %v327_v63 = vld [vmem:[%s686_s1 + $0x50] sm:$0xf0]  ;;  %v333_v0 = vld [vmem:[%s686_s1 + $0x48] sm:$0xf]  ;;  %v326_v4 = vor.u32 %v430_v60, %v325_v59 }
  0x10   :  { %214 = vmatpush.bf16.msra.mxu0 %v358_v44  ;;  %v431_v1 = vld [vmem:[%s686_s1 + $0x54] sm:$0xf0]  ;;  %v429_v2 = vld [vmem:[%s686_s1 + $0x4c] sm:$0xf]  ;;  %v335_v3 = vld [vmem:[%s686_s1 + $0x58] sm:$0xf0]  ;;  %v330_v5 = vor.u32 %v428_v61, %v327_v63 }
  0x11   :  { %228 = vmatpush.bf16.msra.mxu1 %v362_v45  ;;  %242 = vmatpush.bf16.msra.mxu2 %v366_v46  ;;  %v334_v6 = vor.u32 %v431_v1, %v333_v0  ;;  %v309_v7 = vld [vmem:[%s686_s1 + $0x20] sm:$0xf]  ;;  %v426_v8 = vld [vmem:[%s686_s1 + $0x2c] sm:$0xf0]  ;;  %v424_v9 = vld [vmem:[%s686_s1 + $0x24] sm:$0xf]  ;;  %v338_v10 = vor.u32 %v429_v2, %v335_v3 }
  0x12   :  { %256 = vmatpush.bf16.msra.mxu3 %v370_v50  ;;  %v311_v11 = vld [vmem:[%s686_s1 + $0x30] sm:$0xf0]  ;;  %v317_v12 = vld [vmem:[%s686_s1 + $0x28] sm:$0xf]  ;;  %v427_v13 = vld [vmem:[%s686_s1 + $0x34] sm:$0xf0]  ;;  %v310_v16 = vor.u32 %v426_v8, %v309_v7 }
  0x13   :  { %v425_v14 = vld [vmem:[%s686_s1 + $0x2c] sm:$0xf]  ;;  %v319_v15 = vld [vmem:[%s686_s1 + $0x38] sm:$0xf0]  ;;  %v314_v17 = vor.u32 %v424_v9, %v311_v11  ;;  %v318_v18 = vor.u32 %v427_v13, %v317_v12  ;;  %v293_v19 = vld [vmem:[%s686_s1] sm:$0xf] }
  0x14   :  { %215 = vmatpush.bf16.msra.mxu0 %v342_v56  ;;  %v422_v20 = vld [vmem:[%s686_s1 + $0xc] sm:$0xf0]  ;;  %v420_v21 = vld [vmem:[%s686_s1 + $0x4] sm:$0xf]  ;;  %v322_v22 = vor.u32 %v425_v14, %v319_v15  ;;  %v295_v23 = vld [vmem:[%s686_s1 + $0x10] sm:$0xf0] }
  0x15   :  { %229 = vmatpush.bf16.msra.mxu1 %v346_v57  ;;  %243 = vmatpush.bf16.msra.mxu2 %v350_v58  ;;  %v301_v24 = vld [vmem:[%s686_s1 + $0x8] sm:$0xf]  ;;  %v423_v25 = vld [vmem:[%s686_s1 + $0x14] sm:$0xf0]  ;;  %v421_v26 = vld [vmem:[%s686_s1 + $0xc] sm:$0xf]  ;;  %v294_v28 = vor.u32 %v422_v20, %v293_v19  ;;  %v298_v29 = vor.u32 %v420_v21, %v295_v23 }
  0x16   :  { %257 = vmatpush.bf16.msra.mxu3 %v354_v62  ;;  %v303_v27 = vld [vmem:[%s686_s1 + $0x18] sm:$0xf0]  ;;  %v302_v30 = vor.u32 %v423_v25, %v301_v24  ;;  %v419_v32 = vld [vmem:[%s687_s0] sm:$0xff] }
  0x17   :  { %v306_v31 = vor.u32 %v421_v26, %v303_v27 }
  0x18   :  { %216 = vmatpush.bf16.msra.mxu0 %v326_v4 }
  0x19   :  { %230 = vmatpush.bf16.msra.mxu1 %v330_v5  ;;  %244 = vmatpush.bf16.msra.mxu2 %v334_v6 }
  0x1a   :  { %258 = vmatpush.bf16.msra.mxu3 %v338_v10 }
  0x1c   :  { %217 = vmatpush.bf16.msra.mxu0 %v310_v16 }
  0x1d   :  { %231 = vmatpush.bf16.msra.mxu1 %v314_v17  ;;  %245 = vmatpush.bf16.msra.mxu2 %v318_v18 }
  0x1e   :  { %259 = vmatpush.bf16.msra.mxu3 %v322_v22 }
  0x20   :  { %218 = vmatpush.bf16.msra.mxu0 %v294_v28 }
  0x21   :  { %232 = vmatpush.bf16.msra.mxu1 %v298_v29  ;;  %246 = vmatpush.bf16.msra.mxu2 %v302_v30 }
  0x22   :  { %260 = vmatpush.bf16.msra.mxu3 %v306_v31 }
  0x23   :  { %219 = vmatmul.bf16.vlgmr.msra.gmra.mxu0 %v419_v32 }
  0x24   :  { %233 = vmatmul.bf16.vlgmr.msra.gmra.mxu1 %v419_v32  ;;  %247 = vmatmul.bf16.vlgmr.msra.gmra.mxu2 %v419_v32 }
  0x25   :  { %261 = vmatmul.bf16.vlgmr.msra.gmra.mxu3 %v419_v32 }
  0xa0   :  { %v220_v33 = vpop.f32.mrf.mxu0 }
  0xa1   :  { %v267_v34 = vmax.f32 %v220_v33, 0.0  ;;  %v234_v35 = vpop.f32.mrf.mxu1 }
  0xa2   :  { %v268_v36 = vmax.f32 %v234_v35, 0.0 }
  0xa3   :  { %275 = vst [vmem:[%s688_s2] sm:$0xff] %v267_v34 }
  0xa4   :  { %276 = vst [vmem:[%s688_s2 + $0x8] sm:$0xff] %v268_v36 }
  0xa7   :  { %v248_v37 = vpop.f32.mrf.mxu2 }
  0xa8   :  { %v269_v38 = vmax.f32 %v248_v37, 0.0  ;;  %v262_v39 = vpop.f32.mrf.mxu3  ;;  %v222_v40 = vpop.f32.mrf.mxu0 }
  0xa9   :  { %v270_v41 = vmax.f32 %v262_v39, 0.0  ;;  %v271_v42 = vmax.f32 %v222_v40, 0.0  ;;  %v236_v43 = vpop.f32.mrf.mxu1 }
  0xaa   :  { %277 = vst [vmem:[%s688_s2 + $0x10] sm:$0xff] %v269_v38  ;;  %v272_v44 = vmax.f32 %v236_v43, 0.0 }
  0xab   :  { %278 = vst [vmem:[%s688_s2 + $0x18] sm:$0xff] %v270_v41 }
  0xac   :  { %279 = vst [vmem:[%s688_s2 + $0x20] sm:$0xff] %v271_v42 }
  0xad   :  { %280 = vst [vmem:[%s688_s2 + $0x28] sm:$0xff] %v272_v44 }
  0xaf   :  { %v250_v45 = vpop.f32.mrf.mxu2 }
  0xb0   :  { %v273_v46 = vmax.f32 %v250_v45, 0.0  ;;  %v264_v47 = vpop.f32.mrf.mxu3 }
  0xb1   :  { %v274_v48 = vmax.f32 %v264_v47, 0.0 }
  0xb2   :  { %281 = vst [vmem:[%s688_s2 + $0x30] sm:$0xff] %v273_v46 }
  0xb3   :  { %282 = vst [vmem:[%s688_s2 + $0x38] sm:$0xff] %v274_v48 }

</bundles_post_ra>
